<compile_context>
chip_gen: v6e
topology: v6e:2x2x1
jax: 0.10.0
libtpu: 0.0.40
codegen_flags: <defaults>
</compile_context>

<pallas_src>
import functools

import jax
import jax.numpy as jnp
from jax.experimental import pallas as pl
from jax.experimental.pallas import tpu as pltpu


def _round_up(n, m):
    return ((n + m - 1) // m) * m


def policy_net_kernel(x_ref, w1_ref, b1_ref, w2_ref, b2_ref, w3_ref, b3_ref,
                      out_ref, *, compute_dtype):
    # x tile: (TB, state_dim), f32 in VMEM.  Cast to the MXU compute dtype
    # here (in-kernel cast => no extra HBM pass for x on the bf16 path).
    x = x_ref[...].astype(compute_dtype)

    # fc1 + ReLU  (MXU inputs in compute_dtype, f32 accumulation)
    h1 = jnp.dot(x, w1_ref[...], preferred_element_type=jnp.float32)
    h1 = jnp.maximum(h1 + b1_ref[...].astype(jnp.float32), 0.0)

    # fc2 + ReLU
    h2 = jnp.dot(h1.astype(compute_dtype), w2_ref[...],
                 preferred_element_type=jnp.float32)
    h2 = jnp.maximum(h2 + b2_ref[...].astype(jnp.float32), 0.0)

    # fc3 logits
    logits = jnp.dot(h2.astype(compute_dtype), w3_ref[...],
                     preferred_element_type=jnp.float32)
    logits = logits + b3_ref[...].astype(jnp.float32)

    # Numerically-stable softmax over the action axis, all in f32.
    # Exact normalizer (NOT approx reciprocal) so rows sum to 1 to f32 ulps.
    m = jnp.max(logits, axis=1, keepdims=True)
    e = jnp.exp(logits - m)
    denom = jnp.sum(e, axis=1, keepdims=True)
    out_ref[...] = (e / denom).astype(out_ref.dtype)


def policy_net_forward(x, w1, b1, w2, b2, w3, b3, *,
                       compute_dtype=jnp.float32, batch_tile=2048,
                       out_dtype=jnp.float32):
    """Pallas forward pass.  Returns (batch, action_dim) probabilities."""
    batch, state_dim = x.shape
    hidden_dim = w1.shape[1]
    action_dim = w3.shape[1]

    # Batch tile: multiple of 8 (f32 sublane), capped at `batch_tile`.
    # Keep >= 2 grid steps whenever batch > 8 rows so both v7x TensorCores
    # get work (harmless on v5e/v6e).  Even TB=2048 double-buffered
    # (x + out + weights) is well under the scoped-VMEM default everywhere.
    rows8 = _round_up(batch, 8)
    tb = min(batch_tile, rows8)
    if rows8 > 8:
        tb = min(tb, _round_up(pl.cdiv(rows8, 2), 8))
    padded = _round_up(batch, tb)
    if padded != batch:
        x = jnp.pad(x, ((0, padded - batch), (0, 0)))

    # Pre-cast only the tiny, reused weight matrices (VMEM-resident across the
    # whole grid).  x stays f32 and is cast inside the kernel.
    w1c = w1.astype(compute_dtype)
    w2c = w2.astype(compute_dtype)
    w3c = w3.astype(compute_dtype)

    grid = (padded // tb,)

    # Advisory cost so XLA can overlap this call inside a larger step graph.
    flops = 2 * padded * (state_dim * hidden_dim
                          + hidden_dim * hidden_dim
                          + hidden_dim * action_dim)
    transcendentals = padded * action_dim
    bytes_accessed = (
        padded * state_dim * x.dtype.itemsize
        + sum(a.size * a.dtype.itemsize for a in (w1c, b1, w2c, b2, w3c, b3))
        + padded * action_dim * jnp.dtype(out_dtype).itemsize)

    kernel = functools.partial(policy_net_kernel, compute_dtype=compute_dtype)

    out = pl.pallas_call(
        kernel,
        out_shape=jax.ShapeDtypeStruct((padded, action_dim), out_dtype),
        grid=grid,
        in_specs=[
            # x: one batch tile per grid step.
            pl.BlockSpec((tb, state_dim), lambda i: (i, 0)),
            # Weights / biases: constant index_map -> fetched once, stay
            # VMEM-resident across all grid steps.
            pl.BlockSpec((state_dim, hidden_dim), lambda i: (0, 0)),
            pl.BlockSpec((1, hidden_dim), lambda i: (0, 0)),
            pl.BlockSpec((hidden_dim, hidden_dim), lambda i: (0, 0)),
            pl.BlockSpec((1, hidden_dim), lambda i: (0, 0)),
            pl.BlockSpec((hidden_dim, action_dim), lambda i: (0, 0)),
            pl.BlockSpec((1, action_dim), lambda i: (0, 0)),
        ],
        out_specs=pl.BlockSpec((tb, action_dim), lambda i: (i, 0)),
        compiler_params=pltpu.CompilerParams(
            dimension_semantics=("parallel",)),   # use both TCs on v7x
        cost_estimate=pl.CostEstimate(
            flops=flops,
            transcendentals=transcendentals,
            bytes_accessed=bytes_accessed),
    )(x, w1c, b1, w2c, b2, w3c, b3)

    return out[:batch]


def init_linear(key, fan_in, fan_out):
    # PyTorch nn.Linear default: U(-1/sqrt(fan_in), 1/sqrt(fan_in))
    kw, kb = jax.random.split(key)
    bound = 1.0 / jnp.sqrt(jnp.asarray(fan_in, jnp.float32))
    w = jax.random.uniform(kw, (fan_in, fan_out), jnp.float32, -bound, bound)
    b = jax.random.uniform(kb, (1, fan_out), jnp.float32, -bound, bound)
    return w, b


def reference_forward(x, w1, b1, w2, b2, w3, b3):
    h1 = jax.nn.relu(x @ w1 + b1)
    h2 = jax.nn.relu(h1 @ w2 + b2)
    return jax.nn.softmax(h2 @ w3 + b3, axis=1)


if __name__ == "__main__":
    # Shapes consistent with the module: state_dim -> hidden_dim=64 -> action_dim
    state_dim = 32
    hidden_dim = 64
    action_dim = 16

    key = jax.random.PRNGKey(0)
    k_x, k1, k2, k3, k_big = jax.random.split(key, 5)

    w1, b1 = init_linear(k1, state_dim, hidden_dim)
    w2, b2 = init_linear(k2, hidden_dim, hidden_dim)
    w3, b3 = init_linear(k3, hidden_dim, action_dim)

    # --- Small-batch f32 check (matches the PyTorch module semantics). ---
    batch = 8
    x = jax.random.normal(k_x, (batch, state_dim), jnp.float32)
    out = jax.block_until_ready(
        policy_net_forward(x, w1, b1, w2, b2, w3, b3,
                           compute_dtype=jnp.float32))
    ref = reference_forward(x, w1, b1, w2, b2, w3, b3)
    assert out.shape == (batch, action_dim)
    assert jnp.allclose(out, ref, atol=1e-4, rtol=1e-4)
    assert jnp.allclose(jnp.sum(out, axis=1), 1.0, atol=1e-4)

    # --- Ragged batch, bf16 MXU path (exercises grid > 1 + padding). ---
    big_batch = 200   # not a multiple of 8 * anything convenient on purpose
    xb = jax.random.normal(k_big, (big_batch, state_dim), jnp.float32)
    out_big = jax.block_until_ready(
        policy_net_forward(xb, w1, b1, w2, b2, w3, b3,
                           compute_dtype=jnp.bfloat16))
    ref_big = reference_forward(xb, w1, b1, w2, b2, w3, b3)
    assert out_big.shape == (big_batch, action_dim)
    assert jnp.allclose(out_big, ref_big, atol=3e-2, rtol=3e-2)
    assert jnp.allclose(jnp.sum(out_big, axis=1), 1.0, atol=1e-3)

    print("KERNEL_OK")
</pallas_src>

<mosaic_0001>
module attributes {stable_mosaic.version = 11 : i64} {
  func.func @policy_net_kernel(%arg0: i32, %arg1: memref<8x32xf32, #tpu.memory_space<vmem>>, %arg2: memref<32x64xf32, #tpu.memory_space<vmem>>, %arg3: memref<1x64xf32, #tpu.memory_space<vmem>>, %arg4: memref<64x64xf32, #tpu.memory_space<vmem>>, %arg5: memref<1x64xf32, #tpu.memory_space<vmem>>, %arg6: memref<64x16xf32, #tpu.memory_space<vmem>>, %arg7: memref<1x16xf32, #tpu.memory_space<vmem>>, %arg8: memref<8x16xf32, #tpu.memory_space<vmem>>) attributes {dimension_semantics = [#tpu.dimension_semantics<parallel>], iteration_bounds = array<i64: 1>, scalar_prefetch = 0 : i64, scratch_operands = 0 : i64, tpu.core_type = #tpu.core_type<tc>, window_params = [{transform_indices = @transform_0, window_bounds = array<i64: 8, 32>}, {pipeline_mode = #tpu.pipeline_mode<synchronous>, transform_indices = @transform_1, window_bounds = array<i64: 32, 64>}, {pipeline_mode = #tpu.pipeline_mode<synchronous>, transform_indices = @transform_2, window_bounds = array<i64: 1, 64>}, {pipeline_mode = #tpu.pipeline_mode<synchronous>, transform_indices = @transform_3, window_bounds = array<i64: 64, 64>}, {pipeline_mode = #tpu.pipeline_mode<synchronous>, transform_indices = @transform_4, window_bounds = array<i64: 1, 64>}, {pipeline_mode = #tpu.pipeline_mode<synchronous>, transform_indices = @transform_5, window_bounds = array<i64: 64, 16>}, {pipeline_mode = #tpu.pipeline_mode<synchronous>, transform_indices = @transform_6, window_bounds = array<i64: 1, 16>}, {transform_indices = @transform_7, window_bounds = array<i64: 8, 16>}]} {
    %c0 = arith.constant 0 : index
    %c0_0 = arith.constant 0 : index
    %0 = vector.load %arg1[%c0, %c0_0] : memref<8x32xf32, #tpu.memory_space<vmem>>, vector<8x32xf32>
    %c0_1 = arith.constant 0 : index
    %c0_2 = arith.constant 0 : index
    %1 = vector.load %arg2[%c0_1, %c0_2] : memref<32x64xf32, #tpu.memory_space<vmem>>, vector<32x64xf32>
    %cst = arith.constant dense<0.000000e+00> : vector<8x64xf32>
    %2 = tpu.matmul %0, %1, %cst {dimension_numbers = #tpu.dot_dimension_numbers<[1], [0], [0], [1], [0, 0, 1, 1], [], []>} : vector<8x32xf32>, vector<32x64xf32>, vector<8x64xf32> -> vector<8x64xf32>
    %c0_3 = arith.constant 0 : index
    %c0_4 = arith.constant 0 : index
    %3 = vector.load %arg3[%c0_3, %c0_4] : memref<1x64xf32, #tpu.memory_space<vmem>>, vector<1x64xf32>
    %4 = vector.broadcast %3 : vector<1x64xf32> to vector<8x64xf32>
    %5 = arith.addf %2, %4 : vector<8x64xf32>
    %cst_5 = arith.constant 0.000000e+00 : f32
    %6 = vector.broadcast %cst_5 : f32 to vector<8x64xf32>
    %7 = arith.maximumf %5, %6 : vector<8x64xf32>
    %c0_6 = arith.constant 0 : index
    %c0_7 = arith.constant 0 : index
    %8 = vector.load %arg4[%c0_6, %c0_7] : memref<64x64xf32, #tpu.memory_space<vmem>>, vector<64x64xf32>
    %cst_8 = arith.constant dense<0.000000e+00> : vector<8x64xf32>
    %9 = tpu.matmul %7, %8, %cst_8 {dimension_numbers = #tpu.dot_dimension_numbers<[1], [0], [0], [1], [0, 0, 1, 1], [], []>} : vector<8x64xf32>, vector<64x64xf32>, vector<8x64xf32> -> vector<8x64xf32>
    %c0_9 = arith.constant 0 : index
    %c0_10 = arith.constant 0 : index
    %10 = vector.load %arg5[%c0_9, %c0_10] : memref<1x64xf32, #tpu.memory_space<vmem>>, vector<1x64xf32>
    %11 = vector.broadcast %10 : vector<1x64xf32> to vector<8x64xf32>
    %12 = arith.addf %9, %11 : vector<8x64xf32>
    %cst_11 = arith.constant 0.000000e+00 : f32
    %13 = vector.broadcast %cst_11 : f32 to vector<8x64xf32>
    %14 = arith.maximumf %12, %13 : vector<8x64xf32>
    %c0_12 = arith.constant 0 : index
    %c0_13 = arith.constant 0 : index
    %15 = vector.load %arg6[%c0_12, %c0_13] : memref<64x16xf32, #tpu.memory_space<vmem>>, vector<64x16xf32>
    %cst_14 = arith.constant dense<0.000000e+00> : vector<8x16xf32>
    %16 = tpu.matmul %14, %15, %cst_14 {dimension_numbers = #tpu.dot_dimension_numbers<[1], [0], [0], [1], [0, 0, 1, 1], [], []>} : vector<8x64xf32>, vector<64x16xf32>, vector<8x16xf32> -> vector<8x16xf32>
    %c0_15 = arith.constant 0 : index
    %c0_16 = arith.constant 0 : index
    %17 = vector.load %arg7[%c0_15, %c0_16] : memref<1x16xf32, #tpu.memory_space<vmem>>, vector<1x16xf32>
    %18 = vector.broadcast %17 : vector<1x16xf32> to vector<8x16xf32>
    %19 = arith.addf %16, %18 : vector<8x16xf32>
    %cst_17 = arith.constant dense<0xFF800000> : vector<8xf32>
    %20 = vector.multi_reduction <maximumf>, %19, %cst_17 [1] : vector<8x16xf32> to vector<8xf32>
    %21 = vector.shape_cast %20 : vector<8xf32> to vector<8x1xf32>
    %22 = vector.broadcast %21 : vector<8x1xf32> to vector<8x16xf32>
    %23 = arith.subf %19, %22 : vector<8x16xf32>
    %24 = math.exp %23 : vector<8x16xf32>
    %cst_18 = arith.constant dense<0.000000e+00> : vector<8xf32>
    %25 = vector.multi_reduction <add>, %24, %cst_18 [1] : vector<8x16xf32> to vector<8xf32>
    %26 = vector.shape_cast %25 : vector<8xf32> to vector<8x1xf32>
    %27 = vector.broadcast %26 : vector<8x1xf32> to vector<8x16xf32>
    %28 = arith.divf %24, %27 : vector<8x16xf32>
    %c0_19 = arith.constant 0 : index
    %c0_20 = arith.constant 0 : index
    %29 = vector.load %arg8[%c0_19, %c0_20] : memref<8x16xf32, #tpu.memory_space<vmem>>, vector<8x16xf32>
    tpu.vector_store %arg8[%c0_19, %c0_20], %28 {strides = array<i32>} : memref<8x16xf32, #tpu.memory_space<vmem>>, vector<8x16xf32>,
    return
  }
  func.func @transform_0(%arg0: i32) -> (i32, i32) {
    %c0_i32 = arith.constant 0 : i32
    %c0_i32_0 = arith.constant 0 : i32
    return %arg0, %c0_i32 : i32, i32
  }
  func.func @transform_1(%arg0: i32) -> (i32, i32) {
    %c0_i32 = arith.constant 0 : i32
    %c0_i32_0 = arith.constant 0 : i32
    %c0_i32_1 = arith.constant 0 : i32
    return %c0_i32, %c0_i32_0 : i32, i32
  }
  func.func @transform_2(%arg0: i32) -> (i32, i32) {
    %c0_i32 = arith.constant 0 : i32
    %c0_i32_0 = arith.constant 0 : i32
    %c0_i32_1 = arith.constant 0 : i32
    return %c0_i32, %c0_i32_0 : i32, i32
  }
  func.func @transform_3(%arg0: i32) -> (i32, i32) {
    %c0_i32 = arith.constant 0 : i32
    %c0_i32_0 = arith.constant 0 : i32
    %c0_i32_1 = arith.constant 0 : i32
    return %c0_i32, %c0_i32_0 : i32, i32
  }
  func.func @transform_4(%arg0: i32) -> (i32, i32) {
    %c0_i32 = arith.constant 0 : i32
    %c0_i32_0 = arith.constant 0 : i32
    %c0_i32_1 = arith.constant 0 : i32
    return %c0_i32, %c0_i32_0 : i32, i32
  }
  func.func @transform_5(%arg0: i32) -> (i32, i32) {
    %c0_i32 = arith.constant 0 : i32
    %c0_i32_0 = arith.constant 0 : i32
    %c0_i32_1 = arith.constant 0 : i32
    return %c0_i32, %c0_i32_0 : i32, i32
  }
  func.func @transform_6(%arg0: i32) -> (i32, i32) {
    %c0_i32 = arith.constant 0 : i32
    %c0_i32_0 = arith.constant 0 : i32
    %c0_i32_1 = arith.constant 0 : i32
    return %c0_i32, %c0_i32_0 : i32, i32
  }
  func.func @transform_7(%arg0: i32) -> (i32, i32) {
    %c0_i32 = arith.constant 0 : i32
    %c0_i32_0 = arith.constant 0 : i32
    return %arg0, %c0_i32 : i32, i32
  }
}

</mosaic_0001>

<bundles_post_ra>
// kernel: tpu_custom_call.1
= control target key start
LH: loop header
LB: loop body
LE: loop exit
PB: predicated region body
PF: predicated region fallthrough
CT: control target
= control target key end

     0   :  { %12 = vsyncpa [#allocation3], 0  ;;  %s609_s0 = inlined_call_operand.vmem [shape: f32[8,32], index: 0, kind: input, shape index: {}]   ;;  %s610_s1 = inlined_call_operand.hbm [shape: f32[32,64], index: 1, kind: input, shape index: {}]   ;;  %s611_s2 = inlined_call_operand.vmem [shape: f32[1,64], index: 2, kind: input, shape index: {}]   ;;  %s612_s3 = inlined_call_operand.vmem [shape: f32[64,64], index: 3, kind: input, shape index: {}]   ;;  %s613_s4 = inlined_call_operand.vmem [shape: f32[1,64], index: 4, kind: input, shape index: {}]   ;;  %s614_s5 = inlined_call_operand.vmem [shape: f32[64,16], index: 5, kind: input, shape index: {}]   ;;  %s615_s6 = inlined_call_operand.vmem [shape: f32[1,16], index: 6, kind: input, shape index: {}]   ;;  %s616_s7 = inlined_call_operand.hbm [shape: f32[8,16], index: 7, kind: output, shape index: {}]  }
   0x1   :  { %13 = vsyncpa [#allocation4], 0  ;;  %s466_s24 = smov [#allocation2]  }
   0x2   :  { %s21_s25 = sshll.u32 %s466_s24, 4  ;;  %s22_s25 = int_to_ptr.vmem [resolvable:$true] %s21_s25 }
   0x3   :  { %s430_s26 = scalar_lea.vmem %s22_s25, 512  ;;  %p435_p1 = scmp.lt.s32.totalorder %s22_s25, %s22_s25 }
   0x4   :  { %p431_p0 = scmp.ne.s32.totalorder %s22_s25, %s430_s26  ;;  %p436_p2 = scmp.lt.s32.totalorder %s430_s26, %s430_s26 }
   0x6   :  { %p437_p3 = por %p436_p2, %p435_p1 }
   0x8   :  { %p438_p4 = pnand %p437_p3, %p431_p0 }
   0xa   :  { %441 = shalt.err (!%p438_p4)
}
   0xb   :  { %s467_s27 = smov 128   ;;  %s468_s28 = smov 8  }
   0xc   :  { %27 = dma.hbm_to_vmem [thread:$0]  %s610_s1, 512, %s22_s25, [#allocation3], %s467_s27, %s467_s27, %s468_s28  }
   0xd   :  { %462 = dma.done.wait [#allocation3], 512  }
   0xe   :  { %463 = vsyncadd [#allocation3], 4294966784  ;;  %v469_v0 = vmov 0.0   ;;  %vm470_vm0 = vmmov 0   ;;  %v45_v1 = vld [vmem:[#allocation2 + $0x18] sm:$0xff]  ;;  %v44_v2 = vld [vmem:[#allocation2 + $0x10] sm:$0xff] }
   0xf   :  { %363 = vmatprep.subr.mxu0 %v469_v0  ;;  %371 = vmatprep.mubr.msk.f32.mxu0 %vm470_vm0, %v469_v0  ;;  %v135_v3 = vld [vmem:[%s612_s3 + $0x38] sm:$0xff]  ;;  %v43_v4 = vld [vmem:[#allocation2 + $0x8] sm:$0xff]  ;;  %v134_v5 = vld [vmem:[%s612_s3 + $0x30] sm:$0xff]  ;;  %vm53_vm1 = vcmask 261120   ;;  %vm143_vm2 = vcmask 523264   ;;  %vm306_vm3 = vcmask 130048  }
  0x10   :  { %374 = vmatprep.subr.mxu1 %v469_v0  ;;  %390 = vmatprep.mubr.msk.f32.mxu1 %vm470_vm0, %v469_v0  ;;  %v133_v6 = vld [vmem:[%s612_s3 + $0x28] sm:$0xff]  ;;  %v42_v7 = vld [vmem:[#allocation2] sm:$0xff]  ;;  %v131_v10 = vld [vmem:[%s612_s3 + $0x18] sm:$0xff] }
  0x11   :  { %364 = vmatpush3.msra.mxu0 %v45_v1  ;;  %375 = vmatpush3.msra.mxu1 %v135_v3  ;;  %v41_v8 = vld [vmem:[%s609_s0] sm:$0xff]  ;;  %v130_v11 = vld [vmem:[%s612_s3 + $0x10] sm:$0xff]  ;;  %v129_v12 = vld [vmem:[%s612_s3 + $0x8] sm:$0xff] }
  0x12   :  { %365 = vmatprep.subr.mxu0 %v469_v0  ;;  %376 = vmatprep.subr.mxu1 %v469_v0  ;;  %v132_v9 = vld [vmem:[%s612_s3 + $0x20] sm:$0xff]  ;;  %v225_v14 = vld [vmem:[%s614_s5 + $0x38] sm:$0xff]  ;;  %v224_v15 = vld [vmem:[%s614_s5 + $0x30] sm:$0xff] }
  0x13   :  { %366 = vmatpush3.msra.mxu0 %v44_v2  ;;  %377 = vmatpush3.msra.mxu1 %v134_v5  ;;  %v128_v13 = vld [vmem:[%s612_s3] sm:$0xff]  ;;  %v223_v16 = vld [vmem:[%s614_s5 + $0x28] sm:$0xff]  ;;  %v221_v18 = vld [vmem:[%s614_s5 + $0x18] sm:$0xff] }
  0x14   :  { %367 = vmatprep.subr.mxu0 %v469_v0  ;;  %378 = vmatprep.subr.mxu1 %v469_v0  ;;  %v222_v17 = vld [vmem:[%s614_s5 + $0x20] sm:$0xff]  ;;  %v220_v24 = vld [vmem:[%s614_s5 + $0x10] sm:$0xff]  ;;  %v219_v25 = vld [vmem:[%s614_s5 + $0x8] sm:$0xff] }
  0x15   :  { %368 = vmatpush3.msra.mxu0 %v43_v4  ;;  %379 = vmatpush3.msra.mxu1 %v133_v6  ;;  %v334_v19 = vld [vmem:[%s611_s2] ss:$0 sm:$0xff] }
  0x16   :  { %369 = vmatprep.subr.mxu0 %v469_v0  ;;  %380 = vmatprep.subr.mxu1 %v469_v0  ;;  %v218_v26 = vld [vmem:[%s614_s5] sm:$0xff] }
  0x17   :  { %370 = vmatpush3.msra.mxu0 %v42_v7  ;;  %381 = vmatpush3.msra.mxu1 %v132_v9  ;;  %v336_v27 = vld [vmem:[%s613_s4] ss:$0 sm:$0xff]  ;;  %s471_s4 = smov [#allocation5]  }
  0x18   :  { %372 = vmatmul.mubr.msk.f32.vlgmr.msra.gmra.mxu0 %vm53_vm1, %v41_v8  ;;  %382 = vmatprep.subr.mxu1 %v469_v0  ;;  %v338_v32 = vld [vmem:[%s615_s6] ss:$0 sm:$0xff]  ;;  %s325_s5 = sshll.u32 %s471_s4, 4  ;;  %s326_s5 = int_to_ptr.vmem [resolvable:$true] %s325_s5 }
  0x19   :  { %393 = vmatprep.subr.mxu0 %v469_v0  ;;  %383 = vmatpush3.msra.mxu1 %v131_v10  ;;  %s442_s6 = scalar_lea.vmem %s326_s5, 128  ;;  %p447_p6 = scmp.lt.s32.totalorder %s326_s5, %s326_s5 }
  0x1a   :  { %409 = vmatprep.mubr.msk.f32.mxu0 %vm470_vm0, %v469_v0  ;;  %384 = vmatprep.subr.mxu1 %v469_v0  ;;  %p443_p5 = scmp.ne.s32.totalorder %s326_s5, %s442_s6  ;;  %p448_p7 = scmp.lt.s32.totalorder %s442_s6, %s442_s6 }
  0x1b   :  { %385 = vmatpush3.msra.mxu1 %v130_v11  ;;  %394 = vmatpush3.msra.mxu0 %v225_v14 }
  0x1c   :  { %386 = vmatprep.subr.mxu1 %v469_v0  ;;  %395 = vmatprep.subr.mxu0 %v469_v0  ;;  %p449_p8 = por %p448_p7, %p447_p6 }
  0x1d   :  { %387 = vmatpush3.msra.mxu1 %v129_v12  ;;  %396 = vmatpush3.msra.mxu0 %v224_v15 }
  0x1e   :  { %388 = vmatprep.subr.mxu1 %v469_v0  ;;  %397 = vmatprep.subr.mxu0 %v469_v0  ;;  %p450_p9 = pnand %p449_p8, %p443_p5 }
  0x1f   :  { %389 = vmatpush3.msra.mxu1 %v128_v13  ;;  %398 = vmatpush3.msra.mxu0 %v223_v16 }
  0x20   :  { %399 = vmatprep.subr.mxu0 %v469_v0 }
  0x21   :  { %400 = vmatpush3.msra.mxu0 %v222_v17 }
  0x22   :  { %401 = vmatprep.subr.mxu0 %v469_v0 }
  0x23   :  { %402 = vmatpush3.msra.mxu0 %v221_v18 }
  0x24   :  { %403 = vmatprep.subr.mxu0 %v469_v0 }
  0x25   :  { %404 = vmatpush3.msra.mxu0 %v220_v24 }
  0x26   :  { %405 = vmatprep.subr.mxu0 %v469_v0 }
  0x27   :  { %406 = vmatpush3.msra.mxu0 %v219_v25 }
  0x28   :  { %407 = vmatprep.subr.mxu0 %v469_v0 }
  0x29   :  { %408 = vmatpush3.msra.mxu0 %v218_v26 }
  0xd8   :  { %v123_v20 = vpop.f32.mrf.mxu0 }
  0xd9   :  { %v124_v21 = vadd.f32 %v334_v19, %v123_v20 }
  0xda   :  { %v373_v22 = vpop.f32.mrf.mxu0 }
  0xdb   :  { %v127_v23 = vmax.f32 %v124_v21, 0.0 }
  0xdd   :  { %391 = vmatmul.mubr.msk.f32.vlgmr.msra.gmra.mxu1 %vm143_vm2, %v127_v23 }
 0x19d   :  { %v213_v28 = vpop.f32.mrf.mxu1 }
 0x19e   :  { %v214_v29 = vadd.f32 %v336_v27, %v213_v28 }
 0x19f   :  { %v392_v30 = vpop.f32.mrf.mxu1 }
 0x1a0   :  { %v217_v31 = vmax.f32 %v214_v29, 0.0 }
 0x1a2   :  { %410 = vmatmul.mubr.msk.f32.vlgmr.msra.gmra.mxu0 %vm143_vm2, %v217_v31 }
 0x262   :  { %v302_v33 = vpop.f32.mrf.mxu0 }
 0x263   :  { %v303_v34 = vadd.f32 %v338_v32, %v302_v33 }
 0x264   :  { %v411_v35 = vpop.f32.mrf.mxu0 }
 0x265   :  { %v307_v36 = vsel %vm306_vm3, %v303_v34, -inf }
 0x266   :  { %308 = vmax.xlane.f32.xlu0 %v307_v36 }
 0x2ef   :  { %v309_v37 = vpop.xlane.xlu0 %308 }
 0x2f0   :  { %v310_v38 = vsub.f32 %v303_v34, %v309_v37 }
 0x2f2   :  { %v311_v39 = vmul.f32 1.442695, %v310_v38 }
 0x2f4   :  { %418 = vpow2.f32 %v311_v39 }
 0x301   :  { %v419_v40 = vpop.eup %418 }
 0x302   :  { %v313_v41 = vsel %vm306_vm3, %v419_v40, 0.0 }
 0x303   :  { %314 = vadd.xlane.f32.xlu0 %v313_v41 }
 0x38c   :  { %v315_v42 = vpop.xlane.xlu0 %314 }
 0x38d   :  { %420 = vrcp.f32 %v315_v42 }
 0x39a   :  { %v421_v43 = vpop.eup %420 }
 0x39b   :  { %v317_v44 = vmul.f32 %v421_v43, %v419_v40 }
 0x39d   :  { %318 = vst.msk [vmem:[#allocation5] sm:$0xff] %vm306_vm3, %v317_v44 }
 0x39e   :  { %453 = shalt.err (!%p450_p9)
}
 0x39f   :  { %328 = dma.vmem_to_hbm [thread:$0]  %s326_s5, 128, %s616_s7, [#allocation4]  }
 0x3a0   :  { %464 = dma.done.wait [#allocation4], 128  }
 0x3a1   :  { %465 = vsyncadd [#allocation4], 4294967168 }
 0x3a2   :  { %332 = vsyncpa [#allocation3], 1 }
 0x3a3   :  { %333 = vsyncpa [#allocation4], 1 }

</bundles_post_ra>
